<compile_context>
chip_gen: v5e
topology: v5e:2x2
jax: 0.10.0
libtpu: 0.0.40
codegen_flags: <defaults>
</compile_context>

<pallas_src>
import functools

import jax
import jax.numpy as jnp
from jax import lax
from jax.experimental import pallas as pl
from jax.experimental.pallas import tpu as pltpu


# --------------------------------------------------------------------------- #
# Hardware-aware budgets / tile selection
# --------------------------------------------------------------------------- #
def _physical_vmem_bytes():
    """Physical VMEM per core; conservative 64 MiB (v7x) fallback."""
    try:
        info = pltpu.get_tpu_info()
        v = getattr(info, "vmem_capacity_bytes", None)
        if v:
            return int(v)
    except Exception:
        pass
    return 64 * 1024 * 1024


def _choose_tiles(B, C, L, itemsize, block_cap, max_l_tile):
    """Pick (TB, TL, masked): block = (TB, C, TL), grid = (B//TB, cdiv(L, TL))."""
    cap_from_vmem = block_cap // max(1, C * itemsize)
    tl_cap = max(128, (min(max_l_tile, cap_from_vmem) // 128) * 128)

    if L % 128 == 0:
        TL = 128
        t = min(L, tl_cap)
        while t >= 128:
            if L % t == 0:
                TL = t
                break
            t -= 128
    else:
        # Small L: one full-extent lane block (legal for any size).
        # Large L: lane-dense multiple-of-128 tiles + masking on the last tile.
        TL = L if L <= tl_cap else tl_cap

    # Fold batch rows into the block until we hit ~512 KiB per step (amortizes
    # the ~0.35us per-step overhead).  Keep >=2 batch groups when B >= 2 so the
    # stats pass's leading "parallel" axis can use both v7x TensorCores.
    TB = 1
    blk = C * TL * itemsize
    target = 512 * 1024
    for t in range(1, B + 1):
        if B % t != 0:
            continue
        if B > 1 and t >= B:
            break
        if t * blk > block_cap:
            break
        TB = t
        if TB * blk >= target:
            break

    masked = (L % TL) != 0
    return TB, TL, masked


# --------------------------------------------------------------------------- #
# Kernels
# --------------------------------------------------------------------------- #
def _fused_train_kernel(x_ref, w_ref, rstd_ref, out_ref, new_rstd_ref,
                        *, eps, momentum, n_total):
    """Single pass: whole x resident in VMEM -> stats, normalize, rstd update."""
    x = x_ref[...].astype(jnp.float32)                               # (B, C, L)
    mean = jnp.sum(jnp.sum(x, axis=0, keepdims=True),
                   axis=2, keepdims=True) * (1.0 / n_total)          # (1, C, 1)
    d = x - mean
    m2 = jnp.sum(jnp.sum(d * d, axis=0, keepdims=True), axis=2, keepdims=True)
    # TODO(synk): n_total == 1 -> torch.std gives NaN; we guard the divide instead.
    var = m2 * (1.0 / max(n_total - 1, 1))
    std = jnp.sqrt(var) + jnp.float32(eps)                           # (1, C, 1)
    scale = w_ref[...].astype(jnp.float32) / std                     # C divisions
    out_ref[...] = (x * scale).astype(out_ref.dtype)
    r = rstd_ref[...].astype(jnp.float32)
    new_rstd_ref[...] = ((1.0 - momentum) * r + momentum * std
                         ).astype(new_rstd_ref.dtype)


def _stats_kernel(x_ref, mean_ref, m2_ref, mean_sc, m2_sc,
                  *, tb, tl, seq_len, masked):
    """Pass 1: per-batch-group per-channel (mean, M2) via a streaming Chan combine.

    Grid = (batch groups [parallel], L tiles [arbitrary]); the (1, C, 1) scratch
    is reset whenever a new batch group starts and the partials are emitted on
    the group's last L tile.
    """
    l = pl.program_id(1)

    @pl.when(l == 0)
    def _():
        mean_sc[...] = jnp.zeros_like(mean_sc)
        m2_sc[...] = jnp.zeros_like(m2_sc)

    x = x_ref[...].astype(jnp.float32)                               # (TB, C, TL)
    if masked:
        lane = lax.broadcasted_iota(jnp.int32, x.shape, 2)
        valid = (l * tl + lane) < seq_len
        x = jnp.where(valid, x, 0.0)
        n_b = jnp.minimum(tl, seq_len - l * tl).astype(jnp.float32) * tb
        tile_sum = jnp.sum(jnp.sum(x, axis=0, keepdims=True),
                           axis=2, keepdims=True)                    # (1, C, 1)
        tile_mean = tile_sum / n_b
        d = jnp.where(valid, x - tile_mean, 0.0)
    else:
        n_b = jnp.float32(tb * tl)
        tile_sum = jnp.sum(jnp.sum(x, axis=0, keepdims=True),
                           axis=2, keepdims=True)
        tile_mean = tile_sum * (1.0 / (tb * tl))
        d = x - tile_mean
    tile_m2 = jnp.sum(jnp.sum(d * d, axis=0, keepdims=True), axis=2, keepdims=True)

    # Chan parallel-variance combine with the running (mean, M2) scratch.
    # NOTE: f32 n_a loses integer precision only for TB*L >> 2^24 (negligible).
    n_a = (l * (tb * tl)).astype(jnp.float32)
    w_b = n_b / (n_a + n_b)
    delta = tile_mean - mean_sc[...]
    mean_sc[...] = mean_sc[...] + delta * w_b
    m2_sc[...] = m2_sc[...] + tile_m2 + (delta * delta) * (n_a * w_b)

    @pl.when(l == pl.num_programs(1) - 1)
    def _():
        mean_ref[...] = mean_sc[...]
        m2_ref[...] = m2_sc[...]


def _normalize_kernel(x_ref, scale_ref, out_ref):
    """Pass 2: out = x * (weight / std) -- one multiply per element, in x's dtype."""
    out_ref[...] = (x_ref[...] * scale_ref[...]).astype(out_ref.dtype)


# --------------------------------------------------------------------------- #
# pallas_call wrappers
# --------------------------------------------------------------------------- #
def _stats_pass(x, TB, TL, masked, vmem_limit, use_buffered):
    B, C, L = x.shape
    NB, NL = B // TB, pl.cdiv(L, TL)
    x_bytes = int(B * C * L) * int(jnp.dtype(x.dtype).itemsize)

    if use_buffered:
        x_block = pl.BlockSpec((TB, C, TL), lambda b, l: (b, 0, l),
                               pipeline_mode=pl.Buffered(3))
    else:
        x_block = pl.BlockSpec((TB, C, TL), lambda b, l: (b, 0, l))
    part_block = pl.BlockSpec((1, C, 1), lambda b, l: (b, 0, 0))

    return pl.pallas_call(
        functools.partial(_stats_kernel, tb=TB, tl=TL, seq_len=L, masked=masked),
        out_shape=(jax.ShapeDtypeStruct((NB, C, 1), jnp.float32),
                   jax.ShapeDtypeStruct((NB, C, 1), jnp.float32)),
        grid_spec=pltpu.PrefetchScalarGridSpec(
            num_scalar_prefetch=0,
            grid=(NB, NL),
            in_specs=[x_block],
            out_specs=(part_block, part_block),
            scratch_shapes=[pltpu.VMEM((1, C, 1), jnp.float32),
                            pltpu.VMEM((1, C, 1), jnp.float32)]),
        compiler_params=pltpu.CompilerParams(
            dimension_semantics=("parallel", "arbitrary"),
            vmem_limit_bytes=vmem_limit),
        cost_estimate=pl.CostEstimate(
            flops=int(4 * B * C * L), transcendentals=0,
            bytes_accessed=int(x_bytes + 8 * NB * C)),
    )(x)


def _normalize_pass(x, scale3, TB, TL, vmem_limit):
    B, C, L = x.shape
    x_bytes = int(B * C * L) * int(jnp.dtype(x.dtype).itemsize)
    x_block = pl.BlockSpec((TB, C, TL), lambda b, l: (b, 0, l))
    s_block = pl.BlockSpec((1, C, 1), lambda b, l: (0, 0, 0))

    return pl.pallas_call(
        _normalize_kernel,
        out_shape=jax.ShapeDtypeStruct((B, C, L), x.dtype),
        grid_spec=pltpu.PrefetchScalarGridSpec(
            num_scalar_prefetch=0,
            grid=(B // TB, pl.cdiv(L, TL)),
            in_specs=[x_block, s_block],
            out_specs=x_block),
        compiler_params=pltpu.CompilerParams(
            dimension_semantics=("parallel", "parallel"),
            vmem_limit_bytes=vmem_limit),
        cost_estimate=pl.CostEstimate(
            flops=int(B * C * L), transcendentals=0,
            bytes_accessed=int(2 * x_bytes + 4 * C)),
    )(x, scale3)


def scale_norm_forward(x, weight, running_std, *, eps=1e-5, momentum=0.1,
                       training=True, frozen=False, max_l_tile=2048,
                       force_two_pass=False):
    """ScaleNorm forward for dim=3 inputs of shape (B, C, L).

    Returns (output, new_running_std).  In eval/frozen mode new_running_std is
    the unchanged running_std.  weight may be None (affine=False).
    """
    B, C, L = x.shape
    itemsize = int(jnp.dtype(x.dtype).itemsize)
    w_col = (jnp.ones((C, 1), dtype=jnp.float32) if weight is None
             else jnp.reshape(weight, (C, 1)).astype(jnp.float32))
    rstd_col = jnp.reshape(running_std, (C, 1))

    phys_vmem = _physical_vmem_bytes()
    vmem_limit = int(min(96 << 20, max(32 << 20, phys_vmem // 2)))
    block_cap = vmem_limit // 6                 # headroom for double/triple buffers
    update_stats = training and not frozen
    n_total = B * L

    # ----- fused single-pass path: whole x resident in VMEM ------------------
    if (update_stats and not force_two_pass
            and 4 * B * C * L <= block_cap and B * C * L * itemsize <= block_cap):
        out, new_rstd3 = pl.pallas_call(
            functools.partial(_fused_train_kernel, eps=eps, momentum=momentum,
                              n_total=n_total),
            out_shape=(jax.ShapeDtypeStruct((B, C, L), x.dtype),
                       jax.ShapeDtypeStruct((1, C, 1), running_std.dtype)),
            compiler_params=pltpu.CompilerParams(vmem_limit_bytes=vmem_limit),
            cost_estimate=pl.CostEstimate(
                flops=int(7 * B * C * L), transcendentals=int(C),
                bytes_accessed=int(2 * B * C * L * itemsize + 12 * C)),
        )(x, w_col.reshape(1, C, 1), rstd_col.reshape(1, C, 1))
        return out, new_rstd3.reshape(running_std.shape)

    # ----- two-pass streaming path -------------------------------------------
    TB, TL, masked = _choose_tiles(B, C, L, itemsize, block_cap, max_l_tile)

    if update_stats:
        try:
            mean_p, m2_p = _stats_pass(x, TB, TL, masked, vmem_limit,
                                       use_buffered=True)
        except Exception:
            # Fallback if deeper pipelining is rejected by this jax/Mosaic build.
            mean_p, m2_p = _stats_pass(x, TB, TL, masked, vmem_limit,
                                       use_buffered=False)
        # Merge per-group partials (equal counts n_g = TB * L) in plain JAX.
        n_g = float(TB * L)
        mean_tot = jnp.mean(mean_p, axis=0)                           # (C, 1)
        m2_tot = (jnp.sum(m2_p, axis=0)
                  + n_g * jnp.sum(jnp.square(mean_p - mean_tot), axis=0))
        # TODO(synk): n_total == 1 -> torch.std gives NaN; we guard the divide.
        denom = float(max(n_total - 1, 1))
        std = jnp.sqrt(m2_tot / denom) + jnp.float32(eps)             # (C, 1)
        scale = w_col / std
        new_rstd = ((1.0 - momentum) * rstd_col.astype(jnp.float32)
                    + momentum * std).astype(running_std.dtype
                                             ).reshape(running_std.shape)
    else:
        scale = w_col / rstd_col.astype(jnp.float32)
        new_rstd = running_std

    scale3 = scale.reshape(1, C, 1).astype(x.dtype)   # bf16 stays bf16 on v6e/v7x
    out = _normalize_pass(x, scale3, TB, TL, vmem_limit)
    return out, new_rstd


# --------------------------------------------------------------------------- #
# Pure-JAX reference (PyTorch semantics) + tests
# --------------------------------------------------------------------------- #
def _reference(x, weight, running_std, *, eps, momentum, training=True,
               frozen=False):
    B, C, L = x.shape
    x2d = jnp.transpose(x, (1, 0, 2)).reshape(C, -1).astype(jnp.float32)
    rstd = running_std.reshape(C, 1).astype(jnp.float32)
    if training and not frozen:
        std = jnp.std(x2d, axis=-1, keepdims=True, ddof=1) + eps
        new_rstd = ((1.0 - momentum) * rstd + momentum * std
                    ).astype(running_std.dtype).reshape(running_std.shape)
        xn = x2d / std
    else:
        xn = x2d / rstd
        new_rstd = running_std
    w = jnp.ones((1, C, 1), x.dtype) if weight is None else weight.reshape(1, C, 1)
    out = jnp.transpose(xn.reshape(C, B, L), (1, 0, 2)) * w
    return out.astype(x.dtype), new_rstd


if __name__ == "__main__":
    eps, momentum = 1e-5, 0.1
    key = jax.random.PRNGKey(0)
    k1, k2, k3 = jax.random.split(key, 3)

    # Case 1: small module-like shape (dim=3 -> input (B, C, L)); fused path.
    B, C, L = 2, 4, 16
    x = jax.random.normal(k1, (B, C, L), dtype=jnp.float32) * 2.0 + 0.5
    weight = jnp.ones((1, C, 1), dtype=jnp.float32)          # reset_parameters
    running_std = jnp.ones((C, 1), dtype=jnp.float32)

    out, new_rstd = scale_norm_forward(x, weight, running_std,
                                       eps=eps, momentum=momentum, training=True)
    out = jax.block_until_ready(out)
    new_rstd = jax.block_until_ready(new_rstd)
    ref_out, ref_rstd = _reference(x, weight, running_std, eps=eps,
                                   momentum=momentum, training=True)
    assert jnp.allclose(out, ref_out, atol=2e-5, rtol=2e-5), "train out mismatch"
    assert jnp.allclose(new_rstd, ref_rstd, atol=2e-5, rtol=2e-5), "rstd mismatch"

    # Eval / frozen path (divide by running_std, buffer unchanged).
    out_eval, rstd_eval = scale_norm_forward(x, weight, running_std, eps=eps,
                                             momentum=momentum, training=False)
    jax.block_until_ready(out_eval)
    ref_eval, _ = _reference(x, weight, running_std, eps=eps, momentum=momentum,
                             training=False)
    assert jnp.allclose(out_eval, ref_eval, atol=2e-5, rtol=2e-5), "eval mismatch"
    assert jnp.allclose(rstd_eval, running_std), "eval rstd changed"

    # Case 2: two-pass streaming path: batch-folded (TB=2) blocks, Chan combine
    # across 4 lane tiles, parallel per-group partials merged on host.
    B2, C2, L2 = 4, 8, 512
    x2 = jax.random.normal(k2, (B2, C2, L2), dtype=jnp.float32) - 3.0
    w2 = 0.5 * jnp.ones((1, C2, 1), dtype=jnp.float32)
    rstd2 = jnp.ones((C2, 1), dtype=jnp.float32)
    out2, new_rstd2 = scale_norm_forward(x2, w2, rstd2, eps=eps, momentum=momentum,
                                         training=True, max_l_tile=128,
                                         force_two_pass=True)
    jax.block_until_ready(out2)
    ref_out2, ref_rstd2 = _reference(x2, w2, rstd2, eps=eps, momentum=momentum,
                                     training=True)
    assert jnp.allclose(out2, ref_out2, atol=2e-5, rtol=2e-5), "tiled out mismatch"
    assert jnp.allclose(new_rstd2, ref_rstd2, atol=2e-5, rtol=2e-5), "tiled rstd mismatch"

    # Case 3: L not a multiple of 128 -> masked last lane tile (44 valid lanes).
    B3, C3, L3 = 2, 8, 300
    x3 = jax.random.normal(k3, (B3, C3, L3), dtype=jnp.float32) * 1.5 + 1.0
    w3m = jnp.ones((1, C3, 1), dtype=jnp.float32)
    rstd3m = jnp.ones((C3, 1), dtype=jnp.float32)
    out3, new_rstd3 = scale_norm_forward(x3, w3m, rstd3m, eps=eps,
                                         momentum=momentum, training=True,
                                         max_l_tile=128, force_two_pass=True)
    jax.block_until_ready(out3)
    ref_out3, ref_rstd3 = _reference(x3, w3m, rstd3m, eps=eps, momentum=momentum,
                                     training=True)
    assert jnp.allclose(out3, ref_out3, atol=2e-5, rtol=2e-5), "masked out mismatch"
    assert jnp.allclose(new_rstd3, ref_rstd3, atol=2e-5, rtol=2e-5), "masked rstd mismatch"

    print("KERNEL_OK")
</pallas_src>

<mosaic_0001>
module attributes {stable_mosaic.version = 11 : i64} {
  func.func @_fused_train_kernel(%arg0: memref<2x4x16xf32, #tpu.memory_space<vmem>>, %arg1: memref<1x4x1xf32, #tpu.memory_space<vmem>>, %arg2: memref<1x4x1xf32, #tpu.memory_space<vmem>>, %arg3: memref<2x4x16xf32, #tpu.memory_space<vmem>>, %arg4: memref<1x4x1xf32, #tpu.memory_space<vmem>>) attributes {dimension_semantics = [], scalar_prefetch = 0 : i64, scratch_operands = 0 : i64, tpu.core_type = #tpu.core_type<tc>} {
    %c0 = arith.constant 0 : index
    %c0_0 = arith.constant 0 : index
    %c0_1 = arith.constant 0 : index
    %0 = vector.load %arg0[%c0, %c0_0, %c0_1] : memref<2x4x16xf32, #tpu.memory_space<vmem>>, vector<2x4x16xf32>
    %cst = arith.constant dense<0.000000e+00> : vector<4x16xf32>
    %1 = vector.multi_reduction <add>, %0, %cst [0] : vector<2x4x16xf32> to vector<4x16xf32>
    %2 = vector.shape_cast %1 : vector<4x16xf32> to vector<1x4x16xf32>
    %cst_2 = arith.constant dense<0.000000e+00> : vector<1x4xf32>
    %3 = vector.multi_reduction <add>, %2, %cst_2 [2] : vector<1x4x16xf32> to vector<1x4xf32>
    %4 = vector.shape_cast %3 : vector<1x4xf32> to vector<1x4x1xf32>
    %cst_3 = arith.constant 3.125000e-02 : f32
    %5 = vector.broadcast %cst_3 : f32 to vector<1x4x1xf32>
    %6 = arith.mulf %4, %5 : vector<1x4x1xf32>
    %7 = vector.broadcast %6 : vector<1x4x1xf32> to vector<2x4x16xf32>
    %8 = arith.subf %0, %7 : vector<2x4x16xf32>
    %9 = arith.mulf %8, %8 : vector<2x4x16xf32>
    %cst_4 = arith.constant dense<0.000000e+00> : vector<4x16xf32>
    %10 = vector.multi_reduction <add>, %9, %cst_4 [0] : vector<2x4x16xf32> to vector<4x16xf32>
    %11 = vector.shape_cast %10 : vector<4x16xf32> to vector<1x4x16xf32>
    %cst_5 = arith.constant dense<0.000000e+00> : vector<1x4xf32>
    %12 = vector.multi_reduction <add>, %11, %cst_5 [2] : vector<1x4x16xf32> to vector<1x4xf32>
    %13 = vector.shape_cast %12 : vector<1x4xf32> to vector<1x4x1xf32>
    %cst_6 = arith.constant 0.0322580636 : f32
    %14 = vector.broadcast %cst_6 : f32 to vector<1x4x1xf32>
    %15 = arith.mulf %13, %14 : vector<1x4x1xf32>
    %16 = math.sqrt %15 : vector<1x4x1xf32>
    %cst_7 = arith.constant 9.99999974E-6 : f32
    %17 = vector.broadcast %cst_7 : f32 to vector<1x4x1xf32>
    %18 = arith.addf %16, %17 : vector<1x4x1xf32>
    %c0_8 = arith.constant 0 : index
    %c0_9 = arith.constant 0 : index
    %c0_10 = arith.constant 0 : index
    %19 = vector.load %arg1[%c0_8, %c0_9, %c0_10] : memref<1x4x1xf32, #tpu.memory_space<vmem>>, vector<1x4x1xf32>
    %20 = arith.divf %19, %18 : vector<1x4x1xf32>
    %21 = vector.broadcast %20 : vector<1x4x1xf32> to vector<2x4x16xf32>
    %22 = arith.mulf %0, %21 : vector<2x4x16xf32>
    %c0_11 = arith.constant 0 : index
    %c0_12 = arith.constant 0 : index
    %c0_13 = arith.constant 0 : index
    %23 = vector.load %arg3[%c0_11, %c0_12, %c0_13] : memref<2x4x16xf32, #tpu.memory_space<vmem>>, vector<2x4x16xf32>
    tpu.vector_store %arg3[%c0_11, %c0_12, %c0_13], %22 {strides = array<i32>} : memref<2x4x16xf32, #tpu.memory_space<vmem>>, vector<2x4x16xf32>,
    %c0_14 = arith.constant 0 : index
    %c0_15 = arith.constant 0 : index
    %c0_16 = arith.constant 0 : index
    %24 = vector.load %arg2[%c0_14, %c0_15, %c0_16] : memref<1x4x1xf32, #tpu.memory_space<vmem>>, vector<1x4x1xf32>
    %cst_17 = arith.constant 0.899999976 : f32
    %25 = vector.broadcast %cst_17 : f32 to vector<1x4x1xf32>
    %26 = arith.mulf %25, %24 : vector<1x4x1xf32>
    %cst_18 = arith.constant 1.000000e-01 : f32
    %27 = vector.broadcast %cst_18 : f32 to vector<1x4x1xf32>
    %28 = arith.mulf %27, %18 : vector<1x4x1xf32>
    %29 = arith.addf %26, %28 : vector<1x4x1xf32>
    %c0_19 = arith.constant 0 : index
    %c0_20 = arith.constant 0 : index
    %c0_21 = arith.constant 0 : index
    %30 = vector.load %arg4[%c0_19, %c0_20, %c0_21] : memref<1x4x1xf32, #tpu.memory_space<vmem>>, vector<1x4x1xf32>
    tpu.vector_store %arg4[%c0_19, %c0_20, %c0_21], %29 {strides = array<i32>} : memref<1x4x1xf32, #tpu.memory_space<vmem>>, vector<1x4x1xf32>,
    return
  }
}

</mosaic_0001>

<bundles_post_ra>
// kernel: tpu_custom_call.1
= control target key start
LH: loop header
LB: loop body
LE: loop exit
PB: predicated region body
PF: predicated region fallthrough
CT: control target
= control target key end

     0   :  { %vm19_vm0 = vcmask 125952   ;;  %s205_s0 = inlined_call_operand.vmem [shape: f32[2,4,16], index: 0, kind: input, shape index: {}]   ;;  %s206_s1 = inlined_call_operand.vmem [shape: f32[1,4,1], index: 1, kind: input, shape index: {}]   ;;  %s207_s2 = inlined_call_operand.vmem [shape: f32[1,4,1], index: 2, kind: input, shape index: {}]   ;;  %s208_s3 = inlined_call_operand.hbm [shape: f32[2,4,16], index: 3, kind: output, shape index: {0}]   ;;  %s209_s4 = inlined_call_operand.vmem [shape: f32[1,4,1], index: 4, kind: output, shape index: {1}]  }
   0x1   :  { %v172_v0 = vld [vmem:[%s205_s0] sm:$0xf]  ;;  %v177_v1 = vld [vmem:[%s205_s0 + $0x4] sm:$0xf] }
   0x2   :  { %v20_v2 = vsel %vm19_vm0, %v172_v0, 0.0  ;;  %v21_v3 = vsel %vm19_vm0, %v177_v1, 0.0 }
   0x3   :  { %10 = vsyncpa [#allocation3], 0  ;;  %v22_v4 = vadd.f32 %v21_v3, %v20_v2  ;;  %v140_v16 = vmov 0   ;;  %v76_v28 = vld [vmem:[%s207_s2] sm:$0xf]  ;;  %vm80_vm3 = vcmask 3072  }
   0x4   :  { %108 = vset.pattern.permute.xlu1 %v140_v16  ;;  %109 = vset.pattern.permute.xlu0 %v140_v16  ;;  %v77_v31 = vmul.f32 0.9, %v76_v28  ;;  %v51_v41 = vld [vmem:[%s206_s1] sm:$0xf]  ;;  %s88_s26 = sshll.u32 %s208_s3, 4  ;;  %s142_s1 = smov 64   ;;  %s89_s26 = int_to_ptr.hbm [resolvable:$true] %s88_s26 }
   0x5   :  { %v23_v5 = vsel %vm19_vm0, %v22_v4, 0.0  ;;  %s143_s27 = smov 4  }
   0x6   :  { %24 = vadd.xlane.f32.xlu0 %v23_v5 }
  0x79   :  { %v25_v6 = vpop.xlane.xlu0 %24 }
  0x7a   :  { %v26_v7 = vmul.f32 0.03125, %v25_v6 }
  0x7c   :  { %v27_v8 = vsub.f32 %v172_v0, %v26_v7  ;;  %v28_v9 = vsub.f32 %v177_v1, %v26_v7 }
  0x7e   :  { %v29_v10 = vmul.f32 %v27_v8, %v27_v8  ;;  %v30_v11 = vmul.f32 %v28_v9, %v28_v9 }
  0x80   :  { %v31_v12 = vsel %vm19_vm0, %v29_v10, 0.0  ;;  %v32_v13 = vsel %vm19_vm0, %v30_v11, 0.0 }
  0x81   :  { %v33_v14 = vadd.f32 %v32_v13, %v31_v12 }
  0x83   :  { %v34_v15 = vsel %vm19_vm0, %v33_v14, 0.0 }
  0x84   :  { %35 = vadd.xlane.f32.xlu0 %v34_v15 }
  0xf7   :  { %v36_v17 = vpop.xlane.xlu0 %35 }
  0xf8   :  { %v37_v18 = vmul.f32 0.032258064, %v36_v17 }
  0xfa   :  { %110 = vrsqrt.f32 %v37_v18  ;;  %vm45_vm1 = vcmp.eq.f32.partialorder %v37_v18, inf  ;;  %v48_v26 = vand.u32 2147483648, %v37_v18  ;;  %vm47_vm2 = vcmp.eq.f32.partialorder %v37_v18, 0.0 }
 0x100   :  { %v111_v19 = vpop.eup %110 }
 0x101   :  { %v39_v20 = vmul.f32 %v111_v19, %v37_v18 }
 0x103   :  { %v40_v21 = vmul.f32 %v111_v19, %v39_v20 }
 0x105   :  { %v41_v22 = vmul.f32 0.5, %v40_v21 }
 0x107   :  { %v42_v23 = vsub.f32 1.5, %v41_v22 }
 0x109   :  { %v43_v24 = vmul.f32 %v111_v19, %v42_v23 }
 0x10b   :  { %v44_v25 = vmul.f32 %v43_v24, %v37_v18 }
 0x10d   :  { %v46_v27 = vsel %vm45_vm1, %v37_v18, %v44_v25 }
 0x10e   :  { %v49_v29 = vsel %vm47_vm2, %v48_v26, %v46_v27 }
 0x10f   :  { %v50_v30 = vadd.f32 1e-05, %v49_v29 }
 0x111   :  { %112 = vrcp.f32 %v50_v30  ;;  %v78_v32 = vmul.f32 0.1, %v50_v30  ;;  %v63_v37 = vand.u32 2147483648, %v50_v30  ;;  %v61_v39 = vand.u32 2147483647, %v50_v30 }
 0x112   :  { %vm57_vm5 = vweird.f32 %v50_v30 }
 0x113   :  { %v79_v33 = vadd.f32 %v78_v32, %v77_v31  ;;  %v64_v42 = vor.u32 1.1754944e-38, %v63_v37  ;;  %vm62_vm7 = vcmp.eq.f32.partialorder %v61_v39, 8.507059e+37 }
 0x115   :  { %81 = vst.msk [vmem:[%s209_s4] sm:$0xf] %vm80_vm3, %v79_v33  ;;  %s141_s4 = smov [#allocation2]  }
 0x116   :  { %s86_s23 = sshll.u32 %s141_s4, 4  ;;  %s87_s23 = int_to_ptr.vmem [resolvable:$true] %s86_s23 }
 0x117   :  { %v113_v34 = vpop.eup %112 }
 0x118   :  { %v53_v35 = vmul.f32 %v113_v34, %v50_v30  ;;  %vm58_vm4 = vweird.f32 %v113_v34 }
 0x119   :  { %vm59_vm6 = vmor %vm57_vm5, %vm58_vm4 }
 0x11a   :  { %v54_v36 = vsub.f32 1.0, %v53_v35 }
 0x11c   :  { %v55_v38 = vmul.f32 %v113_v34, %v54_v36 }
 0x11e   :  { %v56_v40 = vadd.f32 %v113_v34, %v55_v38 }
 0x120   :  { %v60_v43 = vsel %vm59_vm6, %v113_v34, %v56_v40 }
 0x121   :  { %v65_v44 = vsel %vm62_vm7, %v64_v42, %v60_v43 }
 0x122   :  { %v66_v45 = vmul.f32 %v65_v44, %v51_v41 }
 0x124   :  { %69 = vperm.xlu1 %108, %v66_v45  }
 0x196   :  { %v70_v46 = vpop.permute.xlu1 %69 }
 0x197   :  { %v72_v47 = vmul.f32 %v70_v46, %v172_v0  ;;  %v73_v48 = vmul.f32 %v70_v46, %v177_v1 }
 0x199   :  { %74 = vst.msk [vmem:[#allocation2] sm:$0xf] %vm19_vm0, %v72_v47 }
 0x19a   :  { %75 = vst.msk [vmem:[#allocation2 + $0x4] sm:$0xf] %vm19_vm0, %v73_v48 }
 0x19b   :  { %94 = dma.vmem_to_hbm [thread:$0]  %s87_s23, 128, %s89_s26, [#allocation3], %s142_s1, %s142_s1, %s143_s27  }
 0x19c   :  { %138 = dma.done.wait [#allocation3], 128  }
 0x19d   :  { %139 = vsyncadd [#allocation3], 4294967168 }
 0x19e   :  { %103 = vsyncpa [#allocation3], 1 }

</bundles_post_ra>
